<compile_context>
chip_gen: v6e
topology: v6e:2x2x1
jax: 0.10.0
libtpu: 0.0.40
codegen_flags: <defaults>
</compile_context>

<pallas_src>
import jax
import jax.numpy as jnp
from jax.experimental import pallas as pl
from jax.experimental.pallas import tpu as pltpu


def _round_up(n, m):
    return ((n + m - 1) // m) * m


# ----------------------------- kernel ----------------------------------------

def embedding_net_kernel(x_ref, w1_ref, t1_ref, w2_ref, t2_ref, out_ref):
    """Fused: relu(x @ W1' + t1') -> relu(h @ W2' + t2').

    W' / t' have eval-mode BatchNorm folded in; Dropout is identity in eval mode.
    Matmuls run bf16 on the MXU with f32 accumulation; elementwise math is f32.
    """
    # --- layer 1: (folded) Linear + BN + ReLU ---
    x = x_ref[...].astype(jnp.bfloat16)            # in-kernel cast; x DMA'd once as f32
    h = jnp.dot(x, w1_ref[...], preferred_element_type=jnp.float32)
    h = jnp.maximum(h + t1_ref[...], 0.0)

    # --- layer 2: (folded) Linear + BN + ReLU ---
    o = jnp.dot(h.astype(jnp.bfloat16), w2_ref[...],
                preferred_element_type=jnp.float32)
    o = jnp.maximum(o + t2_ref[...], 0.0)

    out_ref[...] = o.astype(out_ref.dtype)         # bf16 writeback
    # TODO(synk): training-mode Dropout / batch-statistics BN not implemented (eval semantics).


# ----------------------------- wrapper ----------------------------------------

def _pick_tile_b(batch, tile_b):
    """Batch tile: multiple of 8, <= tile_b, and >= 2 grid tiles when B >= 16
    so v7x's two TensorCores both get work on the 'parallel' axis."""
    b8 = _round_up(batch, 8)
    if b8 <= 8:
        return b8
    half = _round_up((b8 + 1) // 2, 8)
    return max(8, min(tile_b, half))


def embedding_net_forward(x, packed, *, tile_b=512):
    """x: (B, input_size) float32. packed: dict of folded+padded params.

    Returns (B, output_size) bfloat16 (upcast downstream only if needed).
    """
    B, in_size = x.shape
    w1, t1, w2, t2 = packed["w1"], packed["t1"], packed["w2"], packed["t2"]
    hid_pad = w1.shape[1]
    out_size = w2.shape[1]
    assert w1.shape[0] == in_size

    tile_b_eff = _pick_tile_b(B, tile_b)
    grid = (pl.cdiv(B, tile_b_eff),)

    cost = pl.CostEstimate(
        flops=2 * B * (in_size * hid_pad + hid_pad * out_size),
        transcendentals=0,
        bytes_accessed=(x.size * 4 + w1.size * 2 + w2.size * 2
                        + t1.size * 4 + t2.size * 4 + B * out_size * 2),
    )

    out = pl.pallas_call(
        embedding_net_kernel,
        out_shape=jax.ShapeDtypeStruct((B, out_size), jnp.bfloat16),
        grid=grid,
        in_specs=[
            pl.BlockSpec((tile_b_eff, in_size), lambda i: (i, 0)),  # x tile (raw f32)
            pl.BlockSpec((in_size, hid_pad), lambda i: (0, 0)),     # W1' (resident)
            pl.BlockSpec((1, hid_pad), lambda i: (0, 0)),           # t1' (resident)
            pl.BlockSpec((hid_pad, out_size), lambda i: (0, 0)),    # W2' (resident)
            pl.BlockSpec((1, out_size), lambda i: (0, 0)),          # t2' (resident)
        ],
        out_specs=pl.BlockSpec((tile_b_eff, out_size), lambda i: (i, 0)),
        compiler_params=pltpu.CompilerParams(
            dimension_semantics=("parallel",),
        ),
        cost_estimate=cost,
    )(x, w1, t1, w2, t2)

    return out  # (B, output_size) bf16 — no wrapper-side slice pass


# ----------------------------- parameter prep ---------------------------------

def make_params(key, input_size, hidden_size, output_size, eps=1e-5):
    """Deterministic synthetic parameters matching EmbeddingNet(__init__) shapes."""
    ks = jax.random.split(key, 12)

    def linear(kw, kb, fan_in, fan_out):
        bound = 1.0 / jnp.sqrt(fan_in)
        w = jax.random.uniform(kw, (fan_in, fan_out), jnp.float32, -bound, bound)
        b = jax.random.uniform(kb, (1, fan_out), jnp.float32, -bound, bound)
        return w, b

    def bn_fold(kg, kb, km, kv, feat):
        gamma = 1.0 + 0.1 * jax.random.normal(kg, (1, feat), jnp.float32)
        beta = 0.1 * jax.random.normal(kb, (1, feat), jnp.float32)
        run_mean = 0.05 * jax.random.normal(km, (1, feat), jnp.float32)
        run_var = jnp.abs(1.0 + 0.1 * jax.random.normal(kv, (1, feat), jnp.float32))
        s = gamma / jnp.sqrt(run_var + eps)
        t = beta - run_mean * s
        return s, t

    w1, b1 = linear(ks[0], ks[1], input_size, hidden_size)
    s1, t1 = bn_fold(ks[2], ks[3], ks[4], ks[5], hidden_size)
    w2, b2 = linear(ks[6], ks[7], hidden_size, output_size)
    s2, t2 = bn_fold(ks[8], ks[9], ks[10], ks[11], output_size)
    return dict(w1=w1, b1=b1, s1=s1, t1=t1, w2=w2, b2=b2, s2=s2, t2=t2)


def fold_params(p):
    """One-time prep: fold eval-mode BN (scale s, shift t) into Linear weights/bias."""
    w1f = p["w1"] * p["s1"]            # column-wise scale
    t1f = p["b1"] * p["s1"] + p["t1"]
    w2f = p["w2"] * p["s2"]
    t2f = p["b2"] * p["s2"] + p["t2"]
    return dict(w1=w1f, t1=t1f, w2=w2f, t2=t2f)


def pack_params(folded, input_size, hidden_size, output_size, lane=128):
    """Pad only the hidden dim to 128 lanes (zero columns/rows keep math exact);
    weights to bf16 for the MXU, shifts stay f32. Input/output feature dims are
    left un-padded so x and out are DMA'd at their natural widths."""
    hid_pad = _round_up(hidden_size, lane)

    def pad2(a, r, c):
        return jnp.zeros((r, c), a.dtype).at[:a.shape[0], :a.shape[1]].set(a)

    return dict(
        w1=pad2(folded["w1"], input_size, hid_pad).astype(jnp.bfloat16),
        t1=pad2(folded["t1"], 1, hid_pad),                      # padded cols = 0 -> relu(0)=0
        w2=pad2(folded["w2"], hid_pad, output_size).astype(jnp.bfloat16),
        t2=folded["t2"],
    )


# ----------------------------- reference ---------------------------------------

def reference_forward(x, folded):
    """Pure-JAX reference using the same folded params + bf16 matmul/output path."""
    bf16, f32 = jnp.bfloat16, jnp.float32
    h = jnp.dot(x.astype(bf16), folded["w1"].astype(bf16),
                preferred_element_type=f32) + folded["t1"]
    h = jnp.maximum(h, 0.0)
    o = jnp.dot(h.astype(bf16), folded["w2"].astype(bf16),
                preferred_element_type=f32) + folded["t2"]
    return jnp.maximum(o, 0.0).astype(bf16)


if __name__ == "__main__":
    key = jax.random.PRNGKey(0)
    k_x, k_p = jax.random.split(key)

    # EmbeddingNet(input_size=32, output_size=32, dropout=0.1, use_bn=True, hidden_size=64)
    B, INPUT, HIDDEN, OUTPUT = 8, 32, 64, 32
    x = jax.random.normal(k_x, (B, INPUT), jnp.float32)

    raw = make_params(k_p, INPUT, HIDDEN, OUTPUT)
    folded = fold_params(raw)
    packed = pack_params(folded, INPUT, HIDDEN, OUTPUT)

    out = embedding_net_forward(x, packed)
    out = jax.block_until_ready(out)

    ref = reference_forward(x, folded)
    assert out.shape == (B, OUTPUT)
    assert out.dtype == jnp.bfloat16
    assert jnp.allclose(out.astype(jnp.float32), ref.astype(jnp.float32),
                        atol=2e-2, rtol=2e-2), "mismatch vs reference"

    print("KERNEL_OK")
</pallas_src>

<mosaic_0001>
module attributes {stable_mosaic.version = 11 : i64} {
  func.func @embedding_net_kernel(%arg0: i32, %arg1: memref<8x32xf32, #tpu.memory_space<vmem>>, %arg2: memref<32x128xbf16, #tpu.memory_space<vmem>>, %arg3: memref<1x128xf32, #tpu.memory_space<vmem>>, %arg4: memref<128x32xbf16, #tpu.memory_space<vmem>>, %arg5: memref<1x32xf32, #tpu.memory_space<vmem>>, %arg6: memref<8x32xbf16, #tpu.memory_space<vmem>>) attributes {dimension_semantics = [#tpu.dimension_semantics<parallel>], iteration_bounds = array<i64: 1>, scalar_prefetch = 0 : i64, scratch_operands = 0 : i64, tpu.core_type = #tpu.core_type<tc>, window_params = [{transform_indices = @transform_0, window_bounds = array<i64: 8, 32>}, {pipeline_mode = #tpu.pipeline_mode<synchronous>, transform_indices = @transform_1, window_bounds = array<i64: 32, 128>}, {pipeline_mode = #tpu.pipeline_mode<synchronous>, transform_indices = @transform_2, window_bounds = array<i64: 1, 128>}, {pipeline_mode = #tpu.pipeline_mode<synchronous>, transform_indices = @transform_3, window_bounds = array<i64: 128, 32>}, {pipeline_mode = #tpu.pipeline_mode<synchronous>, transform_indices = @transform_4, window_bounds = array<i64: 1, 32>}, {transform_indices = @transform_5, window_bounds = array<i64: 8, 32>}]} {
    %c0 = arith.constant 0 : index
    %c0_0 = arith.constant 0 : index
    %0 = vector.load %arg1[%c0, %c0_0] : memref<8x32xf32, #tpu.memory_space<vmem>>, vector<8x32xf32>
    %1 = arith.truncf %0 : vector<8x32xf32> to vector<8x32xbf16>
    %c0_1 = arith.constant 0 : index
    %c0_2 = arith.constant 0 : index
    %2 = vector.load %arg2[%c0_1, %c0_2] : memref<32x128xbf16, #tpu.memory_space<vmem>>, vector<32x128xbf16>
    %cst = arith.constant dense<0.000000e+00> : vector<8x128xf32>
    %3 = tpu.matmul %1, %2, %cst {dimension_numbers = #tpu.dot_dimension_numbers<[1], [0], [0], [1], [0, 0, 1, 1], [], []>} : vector<8x32xbf16>, vector<32x128xbf16>, vector<8x128xf32> -> vector<8x128xf32>
    %c0_3 = arith.constant 0 : index
    %c0_4 = arith.constant 0 : index
    %4 = vector.load %arg3[%c0_3, %c0_4] : memref<1x128xf32, #tpu.memory_space<vmem>>, vector<1x128xf32>
    %5 = vector.broadcast %4 : vector<1x128xf32> to vector<8x128xf32>
    %6 = arith.addf %3, %5 : vector<8x128xf32>
    %cst_5 = arith.constant 0.000000e+00 : f32
    %7 = vector.broadcast %cst_5 : f32 to vector<8x128xf32>
    %8 = arith.maximumf %6, %7 : vector<8x128xf32>
    %9 = arith.truncf %8 : vector<8x128xf32> to vector<8x128xbf16>
    %c0_6 = arith.constant 0 : index
    %c0_7 = arith.constant 0 : index
    %10 = vector.load %arg4[%c0_6, %c0_7] : memref<128x32xbf16, #tpu.memory_space<vmem>>, vector<128x32xbf16>
    %cst_8 = arith.constant dense<0.000000e+00> : vector<8x32xf32>
    %11 = tpu.matmul %9, %10, %cst_8 {dimension_numbers = #tpu.dot_dimension_numbers<[1], [0], [0], [1], [0, 0, 1, 1], [], []>} : vector<8x128xbf16>, vector<128x32xbf16>, vector<8x32xf32> -> vector<8x32xf32>
    %c0_9 = arith.constant 0 : index
    %c0_10 = arith.constant 0 : index
    %12 = vector.load %arg5[%c0_9, %c0_10] : memref<1x32xf32, #tpu.memory_space<vmem>>, vector<1x32xf32>
    %13 = vector.broadcast %12 : vector<1x32xf32> to vector<8x32xf32>
    %14 = arith.addf %11, %13 : vector<8x32xf32>
    %cst_11 = arith.constant 0.000000e+00 : f32
    %15 = vector.broadcast %cst_11 : f32 to vector<8x32xf32>
    %16 = arith.maximumf %14, %15 : vector<8x32xf32>
    %17 = arith.truncf %16 : vector<8x32xf32> to vector<8x32xbf16>
    %c0_12 = arith.constant 0 : index
    %c0_13 = arith.constant 0 : index
    %18 = vector.load %arg6[%c0_12, %c0_13] : memref<8x32xbf16, #tpu.memory_space<vmem>>, vector<8x32xbf16>
    tpu.vector_store %arg6[%c0_12, %c0_13], %17 {strides = array<i32>} : memref<8x32xbf16, #tpu.memory_space<vmem>>, vector<8x32xbf16>,
    return
  }
  func.func @transform_0(%arg0: i32) -> (i32, i32) {
    %c0_i32 = arith.constant 0 : i32
    %c0_i32_0 = arith.constant 0 : i32
    return %arg0, %c0_i32 : i32, i32
  }
  func.func @transform_1(%arg0: i32) -> (i32, i32) {
    %c0_i32 = arith.constant 0 : i32
    %c0_i32_0 = arith.constant 0 : i32
    %c0_i32_1 = arith.constant 0 : i32
    return %c0_i32, %c0_i32_0 : i32, i32
  }
  func.func @transform_2(%arg0: i32) -> (i32, i32) {
    %c0_i32 = arith.constant 0 : i32
    %c0_i32_0 = arith.constant 0 : i32
    %c0_i32_1 = arith.constant 0 : i32
    return %c0_i32, %c0_i32_0 : i32, i32
  }
  func.func @transform_3(%arg0: i32) -> (i32, i32) {
    %c0_i32 = arith.constant 0 : i32
    %c0_i32_0 = arith.constant 0 : i32
    %c0_i32_1 = arith.constant 0 : i32
    return %c0_i32, %c0_i32_0 : i32, i32
  }
  func.func @transform_4(%arg0: i32) -> (i32, i32) {
    %c0_i32 = arith.constant 0 : i32
    %c0_i32_0 = arith.constant 0 : i32
    %c0_i32_1 = arith.constant 0 : i32
    return %c0_i32, %c0_i32_0 : i32, i32
  }
  func.func @transform_5(%arg0: i32) -> (i32, i32) {
    %c0_i32 = arith.constant 0 : i32
    %c0_i32_0 = arith.constant 0 : i32
    return %arg0, %c0_i32 : i32, i32
  }
}

</mosaic_0001>

<bundles_post_ra>
// kernel: tpu_custom_call.1
= control target key start
LH: loop header
LB: loop body
LE: loop exit
PB: predicated region body
PF: predicated region fallthrough
CT: control target
= control target key end

     0   :  { %v310_v1 = vmov 0.0   ;;  %vm311_vm0 = vmmov 0   ;;  %vm47_vm1 = vcmask 261120   ;;  %s385_s0 = inlined_call_operand.vmem [shape: f32[8,32], index: 0, kind: input, shape index: {}]   ;;  %s386_s1 = inlined_call_operand.vmem [shape: bf16[32,128], index: 1, kind: input, shape index: {}]   ;;  %s387_s2 = inlined_call_operand.vmem [shape: f32[1,128], index: 2, kind: input, shape index: {}]   ;;  %s388_s3 = inlined_call_operand.vmem [shape: bf16[128,32], index: 3, kind: input, shape index: {}]   ;;  %s389_s4 = inlined_call_operand.vmem [shape: f32[1,32], index: 4, kind: input, shape index: {}]   ;;  %s390_s5 = inlined_call_operand.hbm [shape: bf16[8,32], index: 5, kind: output, shape index: {}]  }
   0x1   :  { %v278_v0 = vld [vmem:[%s386_s1 + $0x8] sm:$0xff]   ;;  %247 = vmatprep.subr.bf16.mxu0 %v310_v1  ;;  %v279_v2 = vld [vmem:[%s386_s1] sm:$0xff]   ;;  %255 = vmatprep.subr.bf16.mxu1 %v310_v1  ;;  %v280_v4 = vld [vmem:[%s388_s3 + $0x38] sm:$0xff]  }
   0x2   :  { %248 = vmatpush3.bf16.msra.mxu0 %v278_v0  ;;  %251 = vmatprep.mubr.msk.bf16.mxu0 %vm311_vm0, %v310_v1  ;;  %v22_v3 = vld [vmem:[%s385_s0] sm:$0xff]  ;;  %v281_v6 = vld [vmem:[%s388_s3 + $0x30] sm:$0xff]   ;;  %v282_v7 = vld [vmem:[%s388_s3 + $0x28] sm:$0xff]  }
   0x3   :  { %249 = vmatprep.subr.bf16.mxu0 %v310_v1  ;;  %271 = vmatprep.mubr.msk.bf16.mxu1 %vm311_vm0, %v310_v1  ;;  %v23_v5 = vpack.c.bf16 %v22_v3, %v22_v3 }
   0x4   :  { %256 = vmatpush3.bf16.msra.mxu1 %v280_v4 }
   0x5   :  { %257 = vmatprep.subr.bf16.mxu1 %v310_v1 }
   0x6   :  { %250 = vmatpush3.bf16.msra.mxu0 %v279_v2 }
   0x8   :  { %258 = vmatpush3.bf16.msra.mxu1 %v281_v6 }
   0x9   :  { %252 = vmatmul.mubr.msk.bf16.vlgmr.msra.gmra.mxu0 %vm47_vm1, %v23_v5  ;;  %259 = vmatprep.subr.bf16.mxu1 %v310_v1 }
   0xa   :  { %10 = vsyncpa [#allocation3], 0  ;;  %v283_v8 = vld [vmem:[%s388_s3 + $0x20] sm:$0xff]   ;;  %v284_v9 = vld [vmem:[%s388_s3 + $0x18] sm:$0xff]   ;;  %vm206_vm2 = vcmask 257024  }
   0xb   :  { %v285_v10 = vld [vmem:[%s388_s3 + $0x10] sm:$0xff]   ;;  %v286_v11 = vld [vmem:[%s388_s3 + $0x8] sm:$0xff]   ;;  %v287_v12 = vld [vmem:[%s388_s3] sm:$0xff]   ;;  %s312_s3 = smov [#allocation2]  }
   0xc   :  { %260 = vmatpush3.bf16.msra.mxu1 %v282_v7  ;;  %v222_v13 = vld [vmem:[%s387_s2] ss:$0 sm:$0xff]  ;;  %s214_s17 = sshll.u32 %s312_s3, 4  ;;  %s215_s17 = int_to_ptr.vmem [resolvable:$true] %s214_s17 }
   0xd   :  { %261 = vmatprep.subr.bf16.mxu1 %v310_v1  ;;  %v226_v21 = vld [vmem:[%s389_s4] ss:$0 sm:$0xff]  ;;  %s288_s2 = scalar_lea.vmem %s215_s17, 64  ;;  %p293_p1 = scmp.lt.s32.totalorder %s215_s17, %s215_s17 }
   0xe   :  { %p289_p0 = scmp.ne.s32.totalorder %s215_s17, %s288_s2  ;;  %p294_p2 = scmp.lt.s32.totalorder %s288_s2, %s288_s2 }
  0x10   :  { %262 = vmatpush3.bf16.msra.mxu1 %v283_v8  ;;  %p295_p3 = por %p294_p2, %p293_p1 }
  0x11   :  { %263 = vmatprep.subr.bf16.mxu1 %v310_v1 }
  0x12   :  { %p296_p4 = pnand %p295_p3, %p289_p0 }
  0x14   :  { %264 = vmatpush3.bf16.msra.mxu1 %v284_v9 }
  0x15   :  { %265 = vmatprep.subr.bf16.mxu1 %v310_v1 }
  0x18   :  { %266 = vmatpush3.bf16.msra.mxu1 %v285_v10 }
  0x19   :  { %267 = vmatprep.subr.bf16.mxu1 %v310_v1 }
  0x1c   :  { %268 = vmatpush3.bf16.msra.mxu1 %v286_v11 }
  0x1d   :  { %269 = vmatprep.subr.bf16.mxu1 %v310_v1 }
  0x20   :  { %270 = vmatpush3.bf16.msra.mxu1 %v287_v12 }
  0xc9   :  { %v85_v14 = vpop.f32.mrf.mxu0 }
  0xca   :  { %v86_v15 = vadd.f32 %v222_v13, %v85_v14 }
  0xcb   :  { %v253_v16 = vpop.f32.mrf.mxu0 }
  0xcc   :  { %v91_v17 = vmax.f32 %v86_v15, 0.0 }
  0xcd   :  { %v88_v18 = vpop.f32.mrf.mxu0 }
  0xce   :  { %v92_v19 = vpack.c.bf16 %v91_v17, %v91_v17 }
  0xcf   :  { %v254_v20 = vpop.f32.mrf.mxu0 }
  0xd0   :  { %272 = vmatmul.mubr.bf16.vlgmr.msra.gmra.mxu1 %v92_v19 }
 0x190   :  { %v198_v22 = vpop.f32.mrf.mxu1 }
 0x191   :  { %v199_v23 = vadd.f32 %v226_v21, %v198_v22 }
 0x192   :  { %v273_v24 = vpop.f32.mrf.mxu1 }
 0x193   :  { %v204_v25 = vmax.f32 %v199_v23, 0.0 }
 0x194   :  { %v201_v26 = vpop.f32.mrf.mxu1 }
 0x195   :  { %v205_v27 = vpack.c.bf16 %v204_v25, %v204_v25 }
 0x196   :  { %v274_v28 = vpop.f32.mrf.mxu1 }
 0x197   :  { %207 = vst.msk [vmem:[#allocation2] sm:$0xf] %vm206_vm2, %v205_v27 }
 0x198   :  { %299 = shalt.err (!%p296_p4)
}
 0x199   :  { %217 = dma.vmem_to_hbm [thread:$0]  %s215_s17, 64, %s390_s5, [#allocation3]  }
 0x19a   :  { %308 = dma.done.wait [#allocation3], 64  }
 0x19b   :  { %309 = vsyncadd [#allocation3], 4294967232 }
 0x19c   :  { %221 = vsyncpa [#allocation3], 1 }

</bundles_post_ra>
